<compile_context>
chip_gen: v7x
topology: tpu7x:2x2x1
jax: 0.10.0
libtpu: 0.0.40
codegen_flags: <defaults>
</compile_context>

<pallas_src>
import functools

import jax
import jax.numpy as jnp
from jax.experimental import pallas as pl
from jax.experimental.pallas import tpu as pltpu


def _round_up(x, m):
    return ((x + m - 1) // m) * m


def _cdiv(a, b):
    return -(-a // b)


def _itemsize(dt):
    return jnp.dtype(dt).itemsize


def _vmem_budget_bytes():
    """Per-core scoped-VMEM budget with headroom for Mosaic internal scratch."""
    cap = 128 * 1024 * 1024
    try:
        info = pltpu.get_tpu_info()
        cap = int(getattr(info, "vmem_capacity_bytes", cap))
    except Exception:
        pass
    if cap <= 64 * 1024 * 1024:          # v7x: 64 MiB per TC -> leave headroom
        return 48 * 1024 * 1024
    return 100 * 1024 * 1024             # v5e / v6e: 128 MiB class


# --------------------------------------------------------------------------- #
# Kernel
# --------------------------------------------------------------------------- #
def _prenorm_linear_kernel(x_ref, w_ref, b_ref, o_ref, *, eps):
    """One (tm, D) token tile: LayerNorm (affine pre-folded) then Linear."""
    x = x_ref[...].astype(jnp.float32)

    # LayerNorm stats over the hidden axis (PyTorch semantics: biased variance,
    # eps inside rsqrt, f32 accumulation).
    mean = jnp.mean(x, axis=-1, keepdims=True)
    centered = x - mean
    var = jnp.mean(centered * centered, axis=-1, keepdims=True)
    xn = centered * jax.lax.rsqrt(var + eps)

    # MXU matmul: LHS cast to the weight's storage dtype (bf16 weights take the
    # native bf16 x bf16 -> f32 fast path), accumulate in f32.
    out = jnp.dot(xn.astype(w_ref.dtype), w_ref[...],
                  preferred_element_type=jnp.float32)
    out = out + b_ref[...]               # folded (beta @ w + wb), kept in f32
    o_ref[...] = out.astype(o_ref.dtype)


# --------------------------------------------------------------------------- #
# One-time parameter fold (hoist out of the per-call path / cache this!)
# --------------------------------------------------------------------------- #
def fold_prenorm_linear_params(gamma, beta, w, wb, *, weight_dtype=None):
    """Fold LayerNorm affine into the Linear:  (xn*g + b) @ w + wb
       == xn @ (g[:,None]*w) + (b @ w + wb).  Also pads output columns to a
       multiple of 128 so in-kernel output stores are lane-dense.

    Returns (w_fold [D, Np], b_fold [1, Np] f32, d_out)."""
    D, d_out = w.shape
    np_ = _round_up(d_out, 128)
    w_f32 = w.astype(jnp.float32)
    w_fold = gamma.astype(jnp.float32)[:, None] * w_f32
    b_fold = beta.astype(jnp.float32) @ w_f32 + wb.astype(jnp.float32)
    if np_ != d_out:
        w_fold = jnp.pad(w_fold, ((0, 0), (0, np_ - d_out)))
        b_fold = jnp.pad(b_fold, (0, np_ - d_out))
    wd = weight_dtype if weight_dtype is not None else w.dtype
    return w_fold.astype(wd), b_fold.reshape(1, np_).astype(jnp.float32), d_out


# --------------------------------------------------------------------------- #
# Tile / budget selection
# --------------------------------------------------------------------------- #
def _select_tiles(m16, D, np_, x_item, w_item, out_item, budget, tm_req, tn_req):
    def footprint(tm_, tn_):
        return (2 * tm_ * D * x_item          # x double-buffer (storage dtype)
                + 2 * D * tn_ * w_item        # weight double-buffer
                + 2 * tm_ * tn_ * out_item    # output double-buffer
                + 2 * tn_ * 4                 # bias
                + tm_ * D * 8                 # f32 LN temporaries
                + tm_ * tn_ * 4)              # f32 matmul accumulator

    # --- tn: keep the whole (padded) weight resident when the budget allows.
    if tn_req is not None:
        tn = max(128, min(_round_up(tn_req, 128), np_))
    else:
        w_budget = int(0.55 * budget)
        tn_max = max(128, (w_budget // (2 * D * w_item)) // 128 * 128)
        if np_ <= tn_max:
            tn = np_
        else:
            nj = _cdiv(np_, tn_max)
            tn = _round_up(_cdiv(np_, nj), 128)   # even-ish tiles, no 33% waste

    # --- tm: big tiles amortize the ~0.35us/step overhead; shrink to fit.
    if tm_req is None:
        tm_req = 256 if budget <= 48 * 1024 * 1024 else 512
    tm = max(16, min(_round_up(tm_req, 16), m16))
    while tm > 16 and footprint(tm, tn) > budget:
        tm = max(16, _round_up(tm // 2, 16))
    while tn > 128 and footprint(tm, tn) > budget:
        tn -= 128

    return tm, tn, footprint(tm, tn)


# --------------------------------------------------------------------------- #
# Fused call (takes pre-folded params)
# --------------------------------------------------------------------------- #
def prenorm_linear_folded(x, w_fold, b_fold, d_out=None, *, eps=1e-5,
                          tm=None, tn=None, out_dtype=None):
    """fn(LayerNorm(x)) with fn = Linear, using pre-folded weight/bias."""
    B, N, D = x.shape
    np_ = w_fold.shape[1]
    if d_out is None:
        d_out = np_
    M = B * N
    out_dtype = out_dtype if out_dtype is not None else x.dtype

    budget = _vmem_budget_bytes()
    x_item = _itemsize(x.dtype)
    w_item = _itemsize(w_fold.dtype)
    o_item = _itemsize(out_dtype)

    # Only pad rows to 16-row granularity if M is ragged (<=15 rows, rare);
    # everything else relies on Pallas masked partial blocks -- no extra HBM
    # pass over the activations.
    m16 = _round_up(M, 16)
    x2d = x.reshape(M, D)
    if m16 != M:
        x2d = jnp.pad(x2d, ((0, m16 - M), (0, 0)))

    tm_eff, tn_eff, fp_bytes = _select_tiles(
        m16, D, np_, x_item, w_item, o_item, budget, tm, tn)

    ni = _cdiv(m16, tm_eff)
    nj = _cdiv(np_, tn_eff)

    # Grid order: full weight residency (nj == 1) -> weight-resident sweep.
    # Otherwise pick the order with less duplicated HBM traffic:
    #   weight-resident re-reads x nj times; x-resident re-reads w ni times.
    if nj == 1:
        weight_resident = True
    else:
        weight_resident = (nj * m16 * D * x_item) <= (ni * D * np_ * w_item)

    if weight_resident:
        grid = (nj, ni)
        x_spec = pl.BlockSpec((tm_eff, D), lambda j, i: (i, 0))
        w_spec = pl.BlockSpec((D, tn_eff), lambda j, i: (0, j))
        b_spec = pl.BlockSpec((1, tn_eff), lambda j, i: (0, j))
        o_spec = pl.BlockSpec((tm_eff, tn_eff), lambda j, i: (i, j))
    else:
        grid = (ni, nj)
        x_spec = pl.BlockSpec((tm_eff, D), lambda i, j: (i, 0))
        w_spec = pl.BlockSpec((D, tn_eff), lambda i, j: (0, j))
        b_spec = pl.BlockSpec((1, tn_eff), lambda i, j: (0, j))
        o_spec = pl.BlockSpec((tm_eff, tn_eff), lambda i, j: (i, j))

    # Scoped-VMEM limit: footprint + headroom, capped per generation (48 MiB on
    # v7x's 64 MiB/TC, up to ~100 MiB on 128 MiB chips).  Each TC holds its own
    # copy of the resident weight tile, so the budget is per-core.
    vmem_limit = int(min(budget, max(fp_bytes + (8 << 20), 32 << 20)))

    kernel = functools.partial(_prenorm_linear_kernel, eps=eps)

    out2d = pl.pallas_call(
        kernel,
        out_shape=jax.ShapeDtypeStruct((m16, np_), out_dtype),
        grid_spec=pltpu.PrefetchScalarGridSpec(
            num_scalar_prefetch=0,
            grid=grid,
            in_specs=[x_spec, w_spec, b_spec],
            out_specs=o_spec,
        ),
        compiler_params=pltpu.CompilerParams(
            dimension_semantics=("parallel", "parallel"),
            vmem_limit_bytes=vmem_limit,
        ),
    )(x2d, w_fold, b_fold)

    if m16 != M or np_ != d_out:
        out2d = out2d[:M, :d_out]
    return out2d.reshape(B, N, d_out)


# --------------------------------------------------------------------------- #
# Convenience wrapper (folds per call -- prefer caching the fold in real use)
# --------------------------------------------------------------------------- #
def prenorm_linear(x, gamma, beta, w, wb, *, eps=1e-5, tm=None, tn=None,
                   compute_dtype=None, out_dtype=None):
    w_fold, b_fold, d_out = fold_prenorm_linear_params(
        gamma, beta, w, wb, weight_dtype=compute_dtype)
    return prenorm_linear_folded(x, w_fold, b_fold, d_out, eps=eps,
                                 tm=tm, tn=tn, out_dtype=out_dtype)


def _reference(x, gamma, beta, w, wb, eps=1e-5):
    xf = x.astype(jnp.float32)
    mean = jnp.mean(xf, axis=-1, keepdims=True)
    var = jnp.mean((xf - mean) ** 2, axis=-1, keepdims=True)
    xn = (xf - mean) * jax.lax.rsqrt(var + eps)
    y = xn * gamma.astype(jnp.float32) + beta.astype(jnp.float32)
    return (y @ w.astype(jnp.float32) + wb.astype(jnp.float32)).astype(x.dtype)


# TODO(synk): PreNorm wraps an arbitrary `fn`; this kernel fuses the Linear case
# (ViT Attention/FeedForward input projection).  Other `fn`s need their own
# fused kernels.

if __name__ == "__main__":
    key = jax.random.PRNGKey(0)

    # --- Small-shape check (toy ViT sizes), f32, tight tolerance.
    B, N, D = 2, 8, 32
    kx, kw, kb, kg, kbe = jax.random.split(key, 5)
    x = jax.random.normal(kx, (B, N, D), dtype=jnp.float32)
    gamma = 1.0 + 0.1 * jax.random.normal(kg, (D,), dtype=jnp.float32)
    beta = 0.1 * jax.random.normal(kbe, (D,), dtype=jnp.float32)
    w = jax.random.normal(kw, (D, D), dtype=jnp.float32) * 0.02
    wb = jax.random.normal(kb, (D,), dtype=jnp.float32) * 0.02

    out = jax.block_until_ready(prenorm_linear(x, gamma, beta, w, wb))
    ref = _reference(x, gamma, beta, w, wb)
    assert out.shape == (B, N, D), out.shape
    assert jnp.allclose(out, ref, atol=1e-4, rtol=1e-4), "f32 small-shape mismatch"

    # --- Ragged token count + explicit multi-row-tile grid (exercises the
    # masked partial last block: no jnp.pad of the activations).
    B2, N2, D2 = 2, 200, 128            # M = 400; tm=128 -> 4 row tiles, last=16
    k2 = jax.random.split(key, 6)
    x2 = jax.random.normal(k2[0], (B2, N2, D2), dtype=jnp.float32)
    g2 = 1.0 + 0.1 * jax.random.normal(k2[1], (D2,), dtype=jnp.float32)
    be2 = 0.1 * jax.random.normal(k2[2], (D2,), dtype=jnp.float32)
    w2 = jax.random.normal(k2[3], (D2, D2), dtype=jnp.float32) * 0.02
    wb2 = jax.random.normal(k2[4], (D2,), dtype=jnp.float32) * 0.02
    ref2 = _reference(x2, g2, be2, w2, wb2)

    # Pre-folded path (the fold is hoisted / done once), forced small tm.
    wf2, bf2, do2 = fold_prenorm_linear_params(g2, be2, w2, wb2)
    out2 = jax.block_until_ready(
        prenorm_linear_folded(x2, wf2, bf2, do2, tm=128))
    assert out2.shape == (B2, N2, D2), out2.shape
    assert jnp.allclose(out2, ref2, atol=1e-4, rtol=1e-4), "f32 tiled mismatch"

    # Default (budget-selected) tiles.
    out2b = jax.block_until_ready(prenorm_linear_folded(x2, wf2, bf2, do2))
    assert jnp.allclose(out2b, ref2, atol=1e-4, rtol=1e-4), "f32 default-tile mismatch"

    # --- bf16-weight MXU fast path (bf16 x bf16 -> f32), loose tolerance since
    # gamma is folded into the bf16 weight before the matmul.
    wf3, bf3, do3 = fold_prenorm_linear_params(
        g2, be2, w2, wb2, weight_dtype=jnp.bfloat16)
    out3 = jax.block_until_ready(prenorm_linear_folded(x2, wf3, bf3, do3))
    assert jnp.allclose(out3.astype(jnp.float32), ref2, atol=5e-2, rtol=5e-2), \
        "bf16 fast-path mismatch"

    # --- Non-128-multiple D_out (exercises lane-dense column padding + slice).
    D_out4 = 192
    w4 = jax.random.normal(k2[5], (D2, D_out4), dtype=jnp.float32) * 0.02
    wb4 = jnp.zeros((D_out4,), dtype=jnp.float32)
    out4 = jax.block_until_ready(prenorm_linear(x2, g2, be2, w4, wb4))
    ref4 = _reference(x2, g2, be2, w4, wb4)
    assert out4.shape == (B2, N2, D_out4), out4.shape
    assert jnp.allclose(out4, ref4, atol=1e-4, rtol=1e-4), "f32 padded-D_out mismatch"

    print("KERNEL_OK")
</pallas_src>

<mosaic_0001>
module attributes {stable_mosaic.version = 11 : i64} {
  func.func @_prenorm_linear_kernel(%arg0: i32, %arg1: i32, %arg2: memref<16x32xf32, #tpu.memory_space<vmem>>, %arg3: memref<32x128xf32, #tpu.memory_space<vmem>>, %arg4: memref<1x128xf32, #tpu.memory_space<vmem>>, %arg5: memref<16x128xf32, #tpu.memory_space<vmem>>) attributes {dimension_semantics = [#tpu.dimension_semantics<parallel>, #tpu.dimension_semantics<parallel>], iteration_bounds = array<i64: 1, 1>, scalar_prefetch = 0 : i64, scratch_operands = 0 : i64, tpu.core_type = #tpu.core_type<tc>, window_params = [{transform_indices = @transform_0, window_bounds = array<i64: 16, 32>}, {transform_indices = @transform_1, window_bounds = array<i64: 32, 128>}, {transform_indices = @transform_2, window_bounds = array<i64: 1, 128>}, {transform_indices = @transform_3, window_bounds = array<i64: 16, 128>}]} {
    %c0 = arith.constant 0 : index
    %c0_0 = arith.constant 0 : index
    %0 = vector.load %arg2[%c0, %c0_0] : memref<16x32xf32, #tpu.memory_space<vmem>>, vector<16x32xf32>
    %cst = arith.constant dense<0.000000e+00> : vector<16xf32>
    %1 = vector.multi_reduction <add>, %0, %cst [1] : vector<16x32xf32> to vector<16xf32>
    %2 = vector.shape_cast %1 : vector<16xf32> to vector<16x1xf32>
    %cst_1 = arith.constant 3.200000e+01 : f32
    %3 = vector.broadcast %cst_1 : f32 to vector<16x1xf32>
    %4 = arith.divf %2, %3 : vector<16x1xf32>
    %5 = vector.broadcast %4 : vector<16x1xf32> to vector<16x32xf32>
    %6 = arith.subf %0, %5 : vector<16x32xf32>
    %7 = arith.mulf %6, %6 : vector<16x32xf32>
    %cst_2 = arith.constant dense<0.000000e+00> : vector<16xf32>
    %8 = vector.multi_reduction <add>, %7, %cst_2 [1] : vector<16x32xf32> to vector<16xf32>
    %9 = vector.shape_cast %8 : vector<16xf32> to vector<16x1xf32>
    %cst_3 = arith.constant 3.200000e+01 : f32
    %10 = vector.broadcast %cst_3 : f32 to vector<16x1xf32>
    %11 = arith.divf %9, %10 : vector<16x1xf32>
    %cst_4 = arith.constant 9.99999974E-6 : f32
    %12 = vector.broadcast %cst_4 : f32 to vector<16x1xf32>
    %13 = arith.addf %11, %12 : vector<16x1xf32>
    %14 = math.rsqrt %13 : vector<16x1xf32>
    %15 = vector.broadcast %14 : vector<16x1xf32> to vector<16x32xf32>
    %16 = arith.mulf %6, %15 : vector<16x32xf32>
    %c0_5 = arith.constant 0 : index
    %c0_6 = arith.constant 0 : index
    %17 = vector.load %arg3[%c0_5, %c0_6] : memref<32x128xf32, #tpu.memory_space<vmem>>, vector<32x128xf32>
    %cst_7 = arith.constant dense<0.000000e+00> : vector<16x128xf32>
    %18 = tpu.matmul %16, %17, %cst_7 {dimension_numbers = #tpu.dot_dimension_numbers<[1], [0], [0], [1], [0, 0, 1, 1], [], []>} : vector<16x32xf32>, vector<32x128xf32>, vector<16x128xf32> -> vector<16x128xf32>
    %c0_8 = arith.constant 0 : index
    %c0_9 = arith.constant 0 : index
    %19 = vector.load %arg4[%c0_8, %c0_9] : memref<1x128xf32, #tpu.memory_space<vmem>>, vector<1x128xf32>
    %20 = vector.broadcast %19 : vector<1x128xf32> to vector<16x128xf32>
    %21 = arith.addf %18, %20 : vector<16x128xf32>
    %c0_10 = arith.constant 0 : index
    %c0_11 = arith.constant 0 : index
    %22 = vector.load %arg5[%c0_10, %c0_11] : memref<16x128xf32, #tpu.memory_space<vmem>>, vector<16x128xf32>
    tpu.vector_store %arg5[%c0_10, %c0_11], %21 {strides = array<i32>} : memref<16x128xf32, #tpu.memory_space<vmem>>, vector<16x128xf32>,
    return
  }
  func.func @transform_0(%arg0: i32, %arg1: i32) -> (i32, i32) {
    %c0_i32 = arith.constant 0 : i32
    %c0_i32_0 = arith.constant 0 : i32
    return %arg1, %c0_i32 : i32, i32
  }
  func.func @transform_1(%arg0: i32, %arg1: i32) -> (i32, i32) {
    %c0_i32 = arith.constant 0 : i32
    %c0_i32_0 = arith.constant 0 : i32
    return %c0_i32, %arg0 : i32, i32
  }
  func.func @transform_2(%arg0: i32, %arg1: i32) -> (i32, i32) {
    %c0_i32 = arith.constant 0 : i32
    %c0_i32_0 = arith.constant 0 : i32
    return %c0_i32, %arg0 : i32, i32
  }
  func.func @transform_3(%arg0: i32, %arg1: i32) -> (i32, i32) {
    %c0_i32 = arith.constant 0 : i32
    return %arg1, %arg0 : i32, i32
  }
}

</mosaic_0001>

<bundles_post_ra>
// kernel: tpu_custom_call.1
= control target key start
LH: loop header
LB: loop body
LE: loop exit
PB: predicated region body
PF: predicated region fallthrough
CT: control target
= control target key end

     0   :  { %8 = vsyncpa [#allocation3], 0  ;;  %s373_s0 = inlined_call_operand.hbm [shape: f32[16,32], index: 0, kind: input, shape index: {}]   ;;  %s374_s1 = inlined_call_operand.hbm [shape: f32[32,128], index: 1, kind: input, shape index: {}]   ;;  %s375_s2 = inlined_call_operand.vmem [shape: f32[1,128], index: 2, kind: input, shape index: {}]   ;;  %s376_s3 = inlined_call_operand.hbm [shape: f32[16,128], index: 3, kind: output, shape index: {}]  }
   0x1   :  { %9 = vsyncpa [#allocation6], 0 }
   0x2   :  { %10 = vsyncpa [#allocation4], 0  ;;  %s294_s12 = smov [#allocation2]   ;;  %s222_s16 = scalar_lea.hbm %s373_s0, 256 }
   0x3   :  { %s16_s13 = sshll.u32 %s294_s12, 4  ;;  %p223_p0 = scmp.ne.s32.totalorder %s373_s0, %s222_s16  ;;  %s17_s13 = int_to_ptr.vmem [resolvable:$true] %s16_s13 }
   0x4   :  { %p226_p1 = scmp.lt.u32.totalorder %s222_s16, %s373_s0 }
   0x6   :  { %p228_p2 = pnand %p226_p1, %p223_p0 }
   0x8   :  { %231 = shalt.err (!%p228_p2)
}
   0x9   :  { %s232_s21 = scalar_lea.vmem %s17_s13, 256  ;;  %p237_p4 = scmp.lt.s32.totalorder %s17_s13, %s17_s13 }
   0xa   :  { %p233_p3 = scmp.ne.s32.totalorder %s17_s13, %s232_s21  ;;  %p238_p5 = scmp.lt.s32.totalorder %s232_s21, %s232_s21 }
   0xc   :  { %p239_p6 = por %p238_p5, %p237_p4 }
   0xe   :  { %p240_p7 = pnand %p239_p6, %p233_p3 }
  0x10   :  { %243 = shalt.err (!%p240_p7)
}
  0x11   :  { %s295_s22 = smov 128   ;;  %s296_s23 = smov 8  }
  0x12   :  { %22 = dma.hbm_to_vmem [thread:$0]  %s373_s0, 256, %s17_s13, [#allocation3], %s295_s22, %s295_s22, %s296_s23  }
  0x13   :  { %s297_s26 = smov [#allocation5]   ;;  %s244_s30 = scalar_lea.hbm %s374_s1, 512 }
  0x14   :  { %s28_s27 = sshll.u32 %s297_s26, 4  ;;  %p245_p8 = scmp.ne.s32.totalorder %s374_s1, %s244_s30  ;;  %s29_s27 = int_to_ptr.vmem [resolvable:$true] %s28_s27 }
  0x15   :  { %p248_p9 = scmp.lt.u32.totalorder %s244_s30, %s374_s1 }
  0x17   :  { %p250_p10 = pnand %p248_p9, %p245_p8 }
  0x19   :  { %253 = shalt.err (!%p250_p10)
}
  0x1a   :  { %s254_s8 = scalar_lea.vmem %s29_s27, 512  ;;  %p259_p12 = scmp.lt.s32.totalorder %s29_s27, %s29_s27 }
  0x1b   :  { %p255_p11 = scmp.ne.s32.totalorder %s29_s27, %s254_s8  ;;  %p260_p13 = scmp.lt.s32.totalorder %s254_s8, %s254_s8 }
  0x1d   :  { %p261_p0 = por %p260_p13, %p259_p12 }
  0x1f   :  { %p262_p1 = pnand %p261_p0, %p255_p11 }
  0x21   :  { %265 = shalt.err (!%p262_p1)
}
  0x22   :  { %34 = dma.hbm_to_vmem [thread:$0]  %s374_s1, 512, %s29_s27, [#allocation6], %s295_s22, %s295_s22, %s296_s23  }
  0x23   :  { %288 = dma.done.wait [#allocation3], 256  }
  0x24   :  { %289 = vsyncadd [#allocation3], 4294967040 }
  0x25   :  { %290 = dma.done.wait [#allocation6], 512  }
  0x26   :  { %291 = vsyncadd [#allocation6], 4294966784  ;;  %vm45_vm0 = vcmask 261120   ;;  %v43_v0 = vld [vmem:[#allocation2] sm:$0xff]  ;;  %v44_v1 = vld [vmem:[#allocation2 + $0x8] sm:$0xff]  ;;  %s298_s11 = smov [#allocation7]  }
  0x27   :  { %v46_v2 = vsel %vm45_vm0, %v43_v0, 0.0  ;;  %v49_v3 = vsel %vm45_vm0, %v44_v1, 0.0  ;;  %v73_v14 = vld [vmem:[#allocation5] sm:$0xff]  ;;  %v74_v15 = vld [vmem:[#allocation5 + $0x8] sm:$0xff]  ;;  %v75_v16 = vld [vmem:[#allocation5 + $0x10] sm:$0xff]  ;;  %s172_s12 = sshll.u32 %s298_s11, 4  ;;  %s173_s12 = int_to_ptr.vmem [resolvable:$true] %s172_s12 }
  0x28   :  { %47 = vadd.xlane.f32.xlu0 %v46_v2  ;;  %v205_v17 = vpack.c.bf16 %v74_v15, %v73_v14  ;;  %v76_v18 = vld [vmem:[#allocation5 + $0x18] sm:$0xff]  ;;  %v185_v30 = vld [vmem:[%s375_s2] ss:$0 sm:$0xff]  ;;  %s266_s13 = scalar_lea.vmem %s173_s12, 256  ;;  %p271_p3 = scmp.lt.s32.totalorder %s173_s12, %s173_s12 }
  0x29   :  { %v209_v19 = vpack.c.bf16 %v76_v18, %v75_v16  ;;  %p267_p2 = scmp.ne.s32.totalorder %s173_s12, %s266_s13  ;;  %p272_p4 = scmp.lt.s32.totalorder %s266_s13, %s266_s13 }
  0x2a   :  { %206 = vmatprep.subr.bf16.mxu0 %v205_v17 }
  0x2b   :  { %208 = vmatpush3.bf16.msra.mxu0 %v205_v17  ;;  %p273_p5 = por %p272_p4, %p271_p3 }
  0x2c   :  { %50 = vadd.xlane.f32.xlu0 %v49_v3  ;;  %210 = vmatprep.subr.bf16.mxu0 %v209_v19 }
  0x2d   :  { %p274_p6 = pnand %p273_p5, %p267_p2 }
  0x2f   :  { %212 = vmatpush3.bf16.msra.mxu0 %v209_v19 }
  0xb5   :  { %v48_v4 = vpop.xlane.xlu0 %47 }
  0xb6   :  { %v53_v5 = vmul.f32 0.03125, %v48_v4 }
  0xb8   :  { %v55_v6 = vsub.f32 %v43_v0, %v53_v5 }
  0xb9   :  { %v51_v7 = vpop.xlane.xlu0 %50 }
  0xba   :  { %v54_v8 = vmul.f32 0.03125, %v51_v7  ;;  %v57_v9 = vmul.f32 %v55_v6, %v55_v6 }
  0xbc   :  { %v56_v10 = vsub.f32 %v44_v1, %v54_v8  ;;  %v59_v11 = vsel %vm45_vm0, %v57_v9, 0.0 }
  0xbd   :  { %60 = vadd.xlane.f32.xlu1 %v59_v11 }
  0xbe   :  { %v58_v12 = vmul.f32 %v56_v10, %v56_v10 }
  0xc0   :  { %v62_v13 = vsel %vm45_vm0, %v58_v12, 0.0 }
  0xc1   :  { %63 = vadd.xlane.f32.xlu1 %v62_v13 }
 0x14a   :  { %v61_v20 = vpop.xlane.xlu1 %60 }
 0x14b   :  { %v65_v21 = vmul.f32 0.03125, %v61_v20 }
 0x14d   :  { %v67_v22 = vadd.f32 1e-05, %v65_v21 }
 0x14e   :  { %v64_v23 = vpop.xlane.xlu1 %63 }
 0x14f   :  { %218 = vrsqrt.f32 %v67_v22  ;;  %v66_v24 = vmul.f32 0.03125, %v64_v23 }
 0x151   :  { %v68_v25 = vadd.f32 1e-05, %v66_v24 }
 0x153   :  { %220 = vrsqrt.f32 %v68_v25 }
 0x159   :  { %v219_v26 = vpop.eup %218 }
 0x15a   :  { %v71_v27 = vmul.f32 %v219_v26, %v55_v6 }
 0x15c   :  { %202 = vmatprep.mubr.msk.f32.mxu0 %vm45_vm0, %v71_v27 }
 0x15d   :  { %v221_v28 = vpop.eup %220 }
 0x15e   :  { %v72_v29 = vmul.f32 %v221_v28, %v56_v10 }
 0x160   :  { %203 = vmatmul.mubr.msk.f32.vlgmr.msra.gmra.mrb[0].mxu0 %vm45_vm0, %v72_v29 }
 0x233   :  { %v204_v31 = vpop.f32.mrb[0].mxu0 }
 0x234   :  { %v162_v32 = vadd.f32 %v204_v31, %v185_v30  ;;  %v156_v33 = vpop.f32.mrb[1].mxu0 }
 0x235   :  { %v157_v34 = vadd.f32 %v185_v30, %v156_v33 }
 0x236   :  { %166 = vst [vmem:[#allocation7 + $0x8] sm:$0xff] %v162_v32 }
 0x237   :  { %165 = vst [vmem:[#allocation7] sm:$0xff] %v157_v34 }
 0x238   :  { %277 = shalt.err (!%p274_p6)
}
 0x239   :  { %s278_s2 = scalar_lea.hbm %s376_s3, 256 }
 0x23a   :  { %p279_p7 = scmp.ne.s32.totalorder %s376_s3, %s278_s2  ;;  %p282_p8 = scmp.lt.u32.totalorder %s278_s2, %s376_s3 }
 0x23c   :  { %p284_p9 = pnand %p282_p8, %p279_p7 }
 0x23e   :  { %287 = shalt.err (!%p284_p9)
}
 0x23f   :  { %178 = dma.vmem_to_hbm [thread:$0]  %s173_s12, 256, %s376_s3, [#allocation4], %s295_s22, %s295_s22, %s296_s23  }
 0x240   :  { %292 = dma.done.wait [#allocation4], 256  }
 0x241   :  { %293 = vsyncadd [#allocation4], 4294967040 }
 0x242   :  { %182 = vsyncpa [#allocation3], 1 }
 0x243   :  { %183 = vsyncpa [#allocation6], 1 }
 0x244   :  { %184 = vsyncpa [#allocation4], 1 }

</bundles_post_ra>
